<compile_context>
chip_gen: v6e
topology: v6e:2x2x1
jax: 0.10.0
libtpu: 0.0.40
codegen_flags: <defaults>
</compile_context>

<pallas_src>
import functools

import jax
import jax.numpy as jnp
from jax.experimental import pallas as pl
from jax.experimental.pallas import tpu as pltpu


def _fused_mlp_kernel(x_ref, b_ref, *w_and_out_refs, layer_dims):
    """One batch tile of the full MLP forward.

    x_ref : (tb, D0)        activation tile (VMEM)
    b_ref : (L, max_N)      all biases, zero-padded to max_N (VMEM, resident)
    w_and_out_refs[:L]      weight refs, layer l has shape (D_l, D_{l+1})
    w_and_out_refs[L]       output ref (tb, D_L)

    Intermediates stay in registers/VMEM; only the final result is stored.
    """
    num_layers = len(layer_dims)
    w_refs = w_and_out_refs[:num_layers]
    o_ref = w_and_out_refs[num_layers]

    biases = b_ref[...]                       # one small load: (L, max_N) f32
    h = x_ref[...]
    for l, (_, n) in enumerate(layer_dims):   # static Python unroll (L is tiny)
        y = jnp.dot(h, w_refs[l][...], preferred_element_type=jnp.float32)
        y = y + biases[l, :n]                 # (n,) broadcasts over batch tile
        if l < num_layers - 1:
            y = jnp.maximum(y, 0.0)           # ReLU; F.dropout(p=0) is a no-op
        h = y
    o_ref[...] = h.astype(o_ref.dtype)


def _pick_batch_tile(batch):
    # Largest multiple-of-8 batch tile that divides the batch (big tiles
    # amortize the per-grid-step overhead; feature dims are tiny so VMEM is
    # never a constraint).  Tiny / awkward batches fall back to one full block.
    for t in (1024, 512, 256, 128, 64, 32, 16, 8):
        if batch % t == 0:
            return t
    return batch


def regression_net_forward(x, params):
    """Fused forward of RegressionNet.  x: (B, D0), params: [(W_l (in,out), b_l)]."""
    B, d0 = x.shape
    layer_dims = tuple((w.shape[0], w.shape[1]) for w, _ in params)
    assert layer_dims[0][0] == d0
    num_layers = len(params)
    out_dim = layer_dims[-1][1]

    # Pack all biases into one (L, max_N) array -> one DMA instead of L.
    max_n = max(n for _, n in layer_dims)
    b_all = jnp.zeros((num_layers, max_n), jnp.float32)
    for l, (_, b) in enumerate(params):
        b_all = b_all.at[l, : b.shape[0]].set(b.astype(jnp.float32))

    tb = _pick_batch_tile(B)
    grid = (B // tb,)

    in_specs = [
        pl.BlockSpec((tb, d0), lambda i: (i, 0)),              # x: batch-tiled
        pl.BlockSpec((num_layers, max_n), lambda i: (0, 0)),   # biases: resident
    ]
    inputs = [x, b_all]
    for (w, _), (k, n) in zip(params, layer_dims):
        in_specs.append(pl.BlockSpec((k, n), lambda i: (0, 0)))  # weights: resident
        inputs.append(w.astype(jnp.float32))

    kernel = functools.partial(_fused_mlp_kernel, layer_dims=layer_dims)
    # Weights/biases are a few KB total; the streamed activation tiles are at
    # most ~(1024 x 64) f32 -> well inside the default scoped-VMEM budget on
    # v5e/v6e/v7x, so no vmem_limit override is needed.
    return pl.pallas_call(
        kernel,
        out_shape=jax.ShapeDtypeStruct((B, out_dim), x.dtype),
        grid=grid,
        in_specs=in_specs,
        out_specs=pl.BlockSpec((tb, out_dim), lambda i: (i, 0)),
        compiler_params=pltpu.CompilerParams(
            # Batch grid axis is embarrassingly parallel -> shards across the
            # 2 TensorCores on v7x; harmless on single-TC v5e/v6e.
            dimension_semantics=("parallel",),
        ),
    )(*inputs)


def init_params(layers, key):
    """Deterministic parameter init matching nn.Linear shapes.

    PyTorch nn.Linear(in, out) has weight (out, in), bias (out,).
    We store the transposed weight (in, out) for the kernel.
    """
    params = []
    for in_size, out_size in zip(layers, layers[1:]):
        key, kw, kb = jax.random.split(key, 3)
        bound = 1.0 / jnp.sqrt(in_size)
        w_pt = jax.random.uniform(kw, (out_size, in_size), jnp.float32,
                                  minval=-bound, maxval=bound)
        b = jax.random.uniform(kb, (out_size,), jnp.float32,
                               minval=-bound, maxval=bound)
        params.append((w_pt.T, b))           # store as (in, out)
    return params


def reference_forward(x, params):
    """Pure-JAX reference of the RegressionNet forward semantics."""
    h = x
    for l, (w, b) in enumerate(params):
        h = h @ w + b
        if l < len(params) - 1:
            h = jnp.maximum(h, 0.0)
    return h


if __name__ == "__main__":
    layers = [32, 64, 32, 8]                 # Layers arg of RegressionNet
    key = jax.random.PRNGKey(0)
    key, kx1, kx2 = jax.random.split(key, 3)
    params = init_params(layers, key)

    # 1) Small batch (single full-extent block, grid of 1).
    x_small = jax.random.normal(kx1, (4, layers[0]), jnp.float32)
    out_small = jax.block_until_ready(regression_net_forward(x_small, params))
    assert out_small.shape == (4, layers[-1]) and out_small.dtype == jnp.float32
    ref_small = reference_forward(x_small, params)
    assert jnp.allclose(out_small, ref_small, atol=1e-5, rtol=1e-5)

    # 2) Larger batch exercises the batch-tiled grid path (tb=128, grid=(3,)).
    x_big = jax.random.normal(kx2, (384, layers[0]), jnp.float32)
    out_big = jax.block_until_ready(regression_net_forward(x_big, params))
    assert out_big.shape == (384, layers[-1])
    ref_big = reference_forward(x_big, params)
    assert jnp.allclose(out_big, ref_big, atol=1e-5, rtol=1e-5)

    # NOTE: for large-batch serving on v6e/v7x, casting x/W to bf16 (keeping the
    # f32 MXU accumulate) would halve DMA bytes; kept f32 here for exactness.
    print("KERNEL_OK")
</pallas_src>

<mosaic_0001>
module attributes {stable_mosaic.version = 11 : i64} {
  func.func @_fused_mlp_kernel(%arg0: i32, %arg1: memref<4x32xf32, #tpu.memory_space<vmem>>, %arg2: memref<3x64xf32, #tpu.memory_space<vmem>>, %arg3: memref<32x64xf32, #tpu.memory_space<vmem>>, %arg4: memref<64x32xf32, #tpu.memory_space<vmem>>, %arg5: memref<32x8xf32, #tpu.memory_space<vmem>>, %arg6: memref<4x8xf32, #tpu.memory_space<vmem>>) attributes {dimension_semantics = [#tpu.dimension_semantics<parallel>], iteration_bounds = array<i64: 1>, scalar_prefetch = 0 : i64, scratch_operands = 0 : i64, tpu.core_type = #tpu.core_type<tc>, window_params = [{transform_indices = @transform_0, window_bounds = array<i64: 4, 32>}, {pipeline_mode = #tpu.pipeline_mode<synchronous>, transform_indices = @transform_1, window_bounds = array<i64: 3, 64>}, {pipeline_mode = #tpu.pipeline_mode<synchronous>, transform_indices = @transform_2, window_bounds = array<i64: 32, 64>}, {pipeline_mode = #tpu.pipeline_mode<synchronous>, transform_indices = @transform_3, window_bounds = array<i64: 64, 32>}, {pipeline_mode = #tpu.pipeline_mode<synchronous>, transform_indices = @transform_4, window_bounds = array<i64: 32, 8>}, {transform_indices = @transform_5, window_bounds = array<i64: 4, 8>}]} {
    %c0 = arith.constant 0 : index
    %c0_0 = arith.constant 0 : index
    %0 = vector.load %arg2[%c0, %c0_0] : memref<3x64xf32, #tpu.memory_space<vmem>>, vector<3x64xf32>
    %c0_1 = arith.constant 0 : index
    %c0_2 = arith.constant 0 : index
    %1 = vector.load %arg1[%c0_1, %c0_2] : memref<4x32xf32, #tpu.memory_space<vmem>>, vector<4x32xf32>
    %c0_3 = arith.constant 0 : index
    %c0_4 = arith.constant 0 : index
    %2 = vector.load %arg3[%c0_3, %c0_4] : memref<32x64xf32, #tpu.memory_space<vmem>>, vector<32x64xf32>
    %cst = arith.constant dense<0.000000e+00> : vector<4x64xf32>
    %3 = tpu.matmul %1, %2, %cst {dimension_numbers = #tpu.dot_dimension_numbers<[1], [0], [0], [1], [0, 0, 1, 1], [], []>} : vector<4x32xf32>, vector<32x64xf32>, vector<4x64xf32> -> vector<4x64xf32>
    %4 = vector.extract_strided_slice %0 {offsets = [0, 0], sizes = [1, 64], strides = [1, 1]} : vector<3x64xf32> to vector<1x64xf32>
    %5 = vector.shape_cast %4 : vector<1x64xf32> to vector<64xf32>
    %6 = vector.shape_cast %5 : vector<64xf32> to vector<1x64xf32>
    %7 = vector.broadcast %6 : vector<1x64xf32> to vector<4x64xf32>
    %8 = arith.addf %3, %7 : vector<4x64xf32>
    %cst_5 = arith.constant 0.000000e+00 : f32
    %9 = vector.broadcast %cst_5 : f32 to vector<4x64xf32>
    %10 = arith.maximumf %8, %9 : vector<4x64xf32>
    %c0_6 = arith.constant 0 : index
    %c0_7 = arith.constant 0 : index
    %11 = vector.load %arg4[%c0_6, %c0_7] : memref<64x32xf32, #tpu.memory_space<vmem>>, vector<64x32xf32>
    %cst_8 = arith.constant dense<0.000000e+00> : vector<4x32xf32>
    %12 = tpu.matmul %10, %11, %cst_8 {dimension_numbers = #tpu.dot_dimension_numbers<[1], [0], [0], [1], [0, 0, 1, 1], [], []>} : vector<4x64xf32>, vector<64x32xf32>, vector<4x32xf32> -> vector<4x32xf32>
    %13 = vector.extract_strided_slice %0 {offsets = [1, 0], sizes = [1, 32], strides = [1, 1]} : vector<3x64xf32> to vector<1x32xf32>
    %14 = vector.shape_cast %13 : vector<1x32xf32> to vector<32xf32>
    %15 = vector.shape_cast %14 : vector<32xf32> to vector<1x32xf32>
    %16 = vector.broadcast %15 : vector<1x32xf32> to vector<4x32xf32>
    %17 = arith.addf %12, %16 : vector<4x32xf32>
    %cst_9 = arith.constant 0.000000e+00 : f32
    %18 = vector.broadcast %cst_9 : f32 to vector<4x32xf32>
    %19 = arith.maximumf %17, %18 : vector<4x32xf32>
    %c0_10 = arith.constant 0 : index
    %c0_11 = arith.constant 0 : index
    %20 = vector.load %arg5[%c0_10, %c0_11] : memref<32x8xf32, #tpu.memory_space<vmem>>, vector<32x8xf32>
    %cst_12 = arith.constant dense<0.000000e+00> : vector<4x8xf32>
    %21 = tpu.matmul %19, %20, %cst_12 {dimension_numbers = #tpu.dot_dimension_numbers<[1], [0], [0], [1], [0, 0, 1, 1], [], []>} : vector<4x32xf32>, vector<32x8xf32>, vector<4x8xf32> -> vector<4x8xf32>
    %22 = vector.extract_strided_slice %0 {offsets = [2, 0], sizes = [1, 8], strides = [1, 1]} : vector<3x64xf32> to vector<1x8xf32>
    %23 = vector.shape_cast %22 : vector<1x8xf32> to vector<8xf32>
    %24 = vector.shape_cast %23 : vector<8xf32> to vector<1x8xf32>
    %25 = vector.broadcast %24 : vector<1x8xf32> to vector<4x8xf32>
    %26 = arith.addf %21, %25 : vector<4x8xf32>
    %c0_13 = arith.constant 0 : index
    %c0_14 = arith.constant 0 : index
    %27 = vector.load %arg6[%c0_13, %c0_14] : memref<4x8xf32, #tpu.memory_space<vmem>>, vector<4x8xf32>
    tpu.vector_store %arg6[%c0_13, %c0_14], %26 {strides = array<i32>} : memref<4x8xf32, #tpu.memory_space<vmem>>, vector<4x8xf32>,
    return
  }
  func.func @transform_0(%arg0: i32) -> (i32, i32) {
    %c0_i32 = arith.constant 0 : i32
    %c0_i32_0 = arith.constant 0 : i32
    return %arg0, %c0_i32 : i32, i32
  }
  func.func @transform_1(%arg0: i32) -> (i32, i32) {
    %c0_i32 = arith.constant 0 : i32
    %c0_i32_0 = arith.constant 0 : i32
    %c0_i32_1 = arith.constant 0 : i32
    return %c0_i32, %c0_i32_0 : i32, i32
  }
  func.func @transform_2(%arg0: i32) -> (i32, i32) {
    %c0_i32 = arith.constant 0 : i32
    %c0_i32_0 = arith.constant 0 : i32
    %c0_i32_1 = arith.constant 0 : i32
    return %c0_i32, %c0_i32_0 : i32, i32
  }
  func.func @transform_3(%arg0: i32) -> (i32, i32) {
    %c0_i32 = arith.constant 0 : i32
    %c0_i32_0 = arith.constant 0 : i32
    %c0_i32_1 = arith.constant 0 : i32
    return %c0_i32, %c0_i32_0 : i32, i32
  }
  func.func @transform_4(%arg0: i32) -> (i32, i32) {
    %c0_i32 = arith.constant 0 : i32
    %c0_i32_0 = arith.constant 0 : i32
    %c0_i32_1 = arith.constant 0 : i32
    return %c0_i32, %c0_i32_0 : i32, i32
  }
  func.func @transform_5(%arg0: i32) -> (i32, i32) {
    %c0_i32 = arith.constant 0 : i32
    %c0_i32_0 = arith.constant 0 : i32
    return %arg0, %c0_i32 : i32, i32
  }
}

</mosaic_0001>

<bundles_post_ra>
// kernel: tpu_custom_call.1
= control target key start
LH: loop header
LB: loop body
LE: loop exit
PB: predicated region body
PF: predicated region fallthrough
CT: control target
= control target key end

     0   :  { %v378_v1 = vmov 0.0   ;;  %vm379_vm0 = vmmov 0   ;;  %s492_s0 = inlined_call_operand.vmem [shape: f32[4,32], index: 0, kind: input, shape index: {}]   ;;  %s493_s1 = inlined_call_operand.vmem [shape: f32[3,64], index: 1, kind: input, shape index: {}]   ;;  %s494_s2 = inlined_call_operand.vmem [shape: f32[32,64], index: 2, kind: input, shape index: {}]   ;;  %s495_s3 = inlined_call_operand.vmem [shape: f32[64,32], index: 3, kind: input, shape index: {}]   ;;  %s496_s4 = inlined_call_operand.vmem [shape: f32[32,8], index: 4, kind: input, shape index: {}]   ;;  %s497_s5 = inlined_call_operand.hbm [shape: f32[4,8], index: 5, kind: output, shape index: {}]  }
   0x1   :  { %v26_v0 = vld [vmem:[%s494_s2 + $0x18] sm:$0xff]  ;;  %312 = vmatprep.subr.mxu0 %v378_v1  ;;  %v25_v2 = vld [vmem:[%s494_s2 + $0x10] sm:$0xff]  ;;  %320 = vmatprep.mubr.msk.f32.mxu0 %vm379_vm0, %v378_v1  ;;  %v24_v5 = vld [vmem:[%s494_s2 + $0x8] sm:$0xff] }
   0x2   :  { %v113_v3 = vld [vmem:[%s495_s3 + $0x38] sm:$0xff]  ;;  %313 = vmatpush3.msra.mxu0 %v26_v0  ;;  %323 = vmatprep.subr.mxu1 %v378_v1  ;;  %v112_v4 = vld [vmem:[%s495_s3 + $0x30] sm:$0xff] }
   0x3   :  { %314 = vmatprep.subr.mxu0 %v378_v1  ;;  %324 = vmatpush3.msra.mxu1 %v113_v3 }
   0x4   :  { %10 = vsyncpa [#allocation3], 0  ;;  %315 = vmatpush3.msra.mxu0 %v25_v2  ;;  %325 = vmatprep.subr.mxu1 %v378_v1  ;;  %v111_v6 = vld [vmem:[%s495_s3 + $0x28] sm:$0xff]  ;;  %v23_v7 = vld [vmem:[%s494_s2] sm:$0xff]  ;;  %vm31_vm1 = vcmask 261120   ;;  %v27_v15 = vlaneseq  ;;  %vm118_vm2 = vcmask 523264  }
   0x5   :  { %316 = vmatprep.subr.mxu0 %v378_v1  ;;  %326 = vmatpush3.msra.mxu1 %v112_v4  ;;  %v22_v8 = vld [vmem:[%s492_s0] sm:$0xf]  ;;  %v109_v10 = vld [vmem:[%s495_s3 + $0x18] sm:$0xff]  ;;  %v108_v11 = vld [vmem:[%s495_s3 + $0x10] sm:$0xff]  ;;  %s380_s25 = smov [#allocation2]   ;;  %vm274_vm3 = vcmask 60416  }
   0x6   :  { %317 = vmatpush3.msra.mxu0 %v24_v5  ;;  %327 = vmatprep.subr.mxu1 %v378_v1  ;;  %v110_v9 = vld [vmem:[%s495_s3 + $0x20] sm:$0xff]  ;;  %v107_v12 = vld [vmem:[%s495_s3 + $0x8] sm:$0xff]  ;;  %v196_v14 = vld [vmem:[%s496_s4 + $0x18] sm:$0xff]  ;;  %v28_v16 = vshrl.u32 %v27_v15, 7  ;;  %s282_s26 = sshll.u32 %s380_s25, 4  ;;  %s283_s26 = int_to_ptr.vmem [resolvable:$true] %s282_s26 }
   0x7   :  { %318 = vmatprep.subr.mxu0 %v378_v1  ;;  %328 = vmatpush3.msra.mxu1 %v111_v6  ;;  %v106_v13 = vld [vmem:[%s495_s3] sm:$0xff]  ;;  %v195_v24 = vld [vmem:[%s496_s4 + $0x10] sm:$0xff]  ;;  %v194_v25 = vld [vmem:[%s496_s4 + $0x8] sm:$0xff]  ;;  %p361_p1 = scmp.lt.s32.totalorder %s283_s26, %s283_s26 }
   0x8   :  { %319 = vmatpush3.msra.mxu0 %v23_v7  ;;  %329 = vmatprep.subr.mxu1 %v378_v1  ;;  %v29_v17 = vsub.s32 0, %v28_v16  ;;  %v21_v18 = vld [vmem:[%s493_s1] sm:$0x7]  ;;  %v116_v27 = vsub.s32 1, %v28_v16  ;;  %v199_v33 = vsub.s32 2, %v28_v16 }
   0x9   :  { %321 = vmatmul.mubr.msk.f32.vlgmr.msra.gmra.mxu0 %vm31_vm1, %v22_v8  ;;  %330 = vmatpush3.msra.mxu1 %v110_v9  ;;  %v193_v26 = vld [vmem:[%s496_s4] sm:$0xff]  ;;  %s356_s4 = scalar_lea.vmem %s283_s26, 64 }
   0xa   :  { %331 = vmatprep.subr.mxu1 %v378_v1  ;;  %339 = vmatprep.mubr.msk.f32.mxu1 %vm379_vm0, %v378_v1  ;;  %v30_v19 = vrot.slane %v21_v18, %v29_v17  ;;  %v117_v28 = vrot.slane %v21_v18, %v116_v27  ;;  %v200_v34 = vrot.slane %v21_v18, %v199_v33  ;;  %p357_p0 = scmp.ne.s32.totalorder %s283_s26, %s356_s4  ;;  %p362_p2 = scmp.lt.s32.totalorder %s356_s4, %s356_s4 }
   0xb   :  { %332 = vmatpush3.msra.mxu1 %v109_v10  ;;  %342 = vmatprep.subr.mxu0 %v378_v1 }
   0xc   :  { %333 = vmatprep.subr.mxu1 %v378_v1  ;;  %350 = vmatprep.mubr.msk.f32.mxu0 %vm379_vm0, %v378_v1  ;;  %p363_p3 = por %p362_p2, %p361_p1 }
   0xd   :  { %334 = vmatpush3.msra.mxu1 %v108_v11  ;;  %343 = vmatpush3.msra.mxu0 %v196_v14 }
   0xe   :  { %335 = vmatprep.subr.mxu1 %v378_v1  ;;  %344 = vmatprep.subr.mxu0 %v378_v1  ;;  %p364_p4 = pnand %p363_p3, %p357_p0 }
   0xf   :  { %336 = vmatpush3.msra.mxu1 %v107_v12  ;;  %345 = vmatpush3.msra.mxu0 %v195_v24 }
  0x10   :  { %337 = vmatprep.subr.mxu1 %v378_v1  ;;  %346 = vmatprep.subr.mxu0 %v378_v1 }
  0x11   :  { %338 = vmatpush3.msra.mxu1 %v106_v13  ;;  %347 = vmatpush3.msra.mxu0 %v194_v25 }
  0x12   :  { %348 = vmatprep.subr.mxu0 %v378_v1 }
  0x13   :  { %349 = vmatpush3.msra.mxu0 %v193_v26 }
  0xc9   :  { %v101_v20 = vpop.f32.mrf.mxu0 }
  0xca   :  { %v102_v21 = vadd.f32 %v101_v20, %v30_v19 }
  0xcb   :  { %v322_v22 = vpop.f32.mrf.mxu0 }
  0xcc   :  { %v105_v23 = vmax.f32 %v102_v21, 0.0 }
  0xce   :  { %340 = vmatmul.mubr.msk.f32.vlgmr.msra.gmra.mxu1 %vm118_vm2, %v105_v23 }
 0x18e   :  { %v188_v29 = vpop.f32.mrf.mxu1 }
 0x18f   :  { %v189_v30 = vadd.f32 %v188_v29, %v117_v28 }
 0x190   :  { %v341_v31 = vpop.f32.mrf.mxu1 }
 0x191   :  { %v192_v32 = vmax.f32 %v189_v30, 0.0 }
 0x193   :  { %351 = vmatmul.mubr.msk.f32.vlgmr.msra.gmra.mxu0 %vm31_vm1, %v192_v32 }
 0x253   :  { %v270_v35 = vpop.f32.mrf.mxu0 }
 0x254   :  { %v271_v36 = vadd.f32 %v270_v35, %v200_v34 }
 0x255   :  { %v352_v37 = vpop.f32.mrf.mxu0 }
 0x256   :  { %275 = vst.msk [vmem:[#allocation2] sm:$0xf] %vm274_vm3, %v271_v36 }
 0x257   :  { %367 = shalt.err (!%p364_p4)
}
 0x258   :  { %285 = dma.vmem_to_hbm [thread:$0]  %s283_s26, 64, %s497_s5, [#allocation3]  }
 0x259   :  { %376 = dma.done.wait [#allocation3], 64  }
 0x25a   :  { %377 = vsyncadd [#allocation3], 4294967232 }
 0x25b   :  { %289 = vsyncpa [#allocation3], 1 }

</bundles_post_ra>
